<compile_context>
chip_gen: v5e
topology: v5e:2x2
jax: 0.10.0
libtpu: 0.0.40
codegen_flags: <defaults>
</compile_context>

<pallas_src>
import functools
import math

import jax
import jax.numpy as jnp
from jax.experimental import pallas as pl
from jax.experimental.pallas import tpu as pltpu

_NEG_LARGE = -1e30  # finite "-inf": padded vocab columns never poison max/sum


def _round_up(x, m):
    return ((x + m - 1) // m) * m


def _generator_kernel(x_ref, w_ref, b_ref, o_ref, logits_ref, m_ref, l_ref):
    # x_ref:      (tm, d_model)   matmul dtype (bf16 by default)
    # w_ref:      (d_model, tn)   matmul dtype
    # b_ref:      (1, tn)         f32 (pre-cast in wrapper)
    # o_ref:      (tm, vocab_p)   output dtype; written once at the last vocab step
    # logits_ref: (tm, vocab_p)   f32 scratch (raw logits for this row tile)
    # m_ref,l_ref:(tm, 1)         f32 running max / sum-of-exp (online softmax state)
    j = pl.program_id(1)
    nj = pl.num_programs(1)
    tn = w_ref.shape[1]

    @pl.when(j == 0)
    def _():
        m_ref[...] = jnp.full(m_ref.shape, _NEG_LARGE, jnp.float32)
        l_ref[...] = jnp.zeros(l_ref.shape, jnp.float32)

    # MXU matmul: low-precision inputs, f32 accumulation.
    logits = jnp.dot(x_ref[...], w_ref[...], preferred_element_type=jnp.float32)
    logits = logits + b_ref[...]

    # Online (running) max / sum-of-exp update over vocab tiles.
    m_prev = m_ref[...]
    m_new = jnp.maximum(m_prev, jnp.max(logits, axis=-1, keepdims=True))
    alpha = jnp.exp(m_prev - m_new)
    l_ref[...] = alpha * l_ref[...] + jnp.sum(
        jnp.exp(logits - m_new), axis=-1, keepdims=True
    )
    m_ref[...] = m_new

    # Stash the raw logits tile; normalize once at the end.
    col = pl.multiple_of(j * tn, tn)
    logits_ref[:, pl.ds(col, tn)] = logits

    @pl.when(j == nj - 1)
    def _():
        lse = m_ref[...] + jnp.log(l_ref[...])
        o_ref[...] = (logits_ref[...] - lse).astype(o_ref.dtype)


@functools.partial(jax.jit, static_argnames=("tm", "tn", "matmul_dtype"))
def generator_forward(x, w, b, *, tm=128, tn=512, matmul_dtype=jnp.bfloat16):
    """log_softmax(x @ w + b, axis=-1).

    x: [..., d_model]; w: [d_model, vocab] (transpose of nn.Linear.weight); b: [vocab].
    """
    *lead, d_model = x.shape
    vocab = w.shape[1]
    rows = math.prod(lead)

    # Tile sizes (clamped so tiny problems don't over-pad).
    tm = min(tm, _round_up(rows, 8))
    tn = min(tn, _round_up(vocab, 128))
    rows_p = _round_up(rows, tm)
    vocab_p = _round_up(vocab, tn)

    x2d = x.reshape(rows, d_model).astype(matmul_dtype)
    if rows_p != rows:
        x2d = jnp.pad(x2d, ((0, rows_p - rows), (0, 0)))
    w_p = w.astype(matmul_dtype)
    b_p = b.astype(jnp.float32)
    if vocab_p != vocab:
        w_p = jnp.pad(w_p, ((0, 0), (0, vocab_p - vocab)))
        b_p = jnp.pad(b_p, (0, vocab_p - vocab), constant_values=_NEG_LARGE)
    b_p = b_p.reshape(1, vocab_p)

    out_dtype = x.dtype
    in_isz = jnp.dtype(matmul_dtype).itemsize
    out_isz = jnp.dtype(out_dtype).itemsize
    # VMEM estimate: double-buffered inputs/output + scratch, with headroom.
    est = (2 * tm * d_model * in_isz
           + 2 * d_model * tn * in_isz
           + 2 * tn * 4
           + 2 * tm * vocab_p * out_isz
           + tm * vocab_p * 4
           + 2 * tm * 4)
    vmem_limit = int(min(max(2 * est + (4 << 20), 32 << 20), 64 << 20))

    grid = (rows_p // tm, vocab_p // tn)

    out2d = pl.pallas_call(
        _generator_kernel,
        out_shape=jax.ShapeDtypeStruct((rows_p, vocab_p), out_dtype),
        grid_spec=pltpu.PrefetchScalarGridSpec(
            num_scalar_prefetch=0,
            grid=grid,
            in_specs=[
                pl.BlockSpec((tm, d_model), lambda i, j: (i, 0)),
                pl.BlockSpec((d_model, tn), lambda i, j: (0, j)),
                pl.BlockSpec((1, tn), lambda i, j: (0, j)),
            ],
            out_specs=pl.BlockSpec((tm, vocab_p), lambda i, j: (i, 0)),
            scratch_shapes=[
                pltpu.VMEM((tm, vocab_p), jnp.float32),   # raw logits for this row tile
                pltpu.VMEM((tm, 1), jnp.float32),         # running max
                pltpu.VMEM((tm, 1), jnp.float32),         # running sum of exp
            ],
        ),
        compiler_params=pltpu.CompilerParams(
            dimension_semantics=("parallel", "arbitrary"),
            vmem_limit_bytes=vmem_limit,
        ),
    )(x2d, w_p, b_p)

    out = out2d[:rows, :vocab]
    return out.reshape(*lead, vocab)


if __name__ == "__main__":
    # Small shapes consistent with the module's forward.
    B, S, d_model, vocab = 2, 8, 32, 128

    key = jax.random.PRNGKey(0)
    kx, kw, kb = jax.random.split(key, 3)

    # Deterministic init mimicking nn.Linear's uniform(-1/sqrt(fan_in), ...).
    bound = 1.0 / (d_model ** 0.5)
    w = jax.random.uniform(kw, (d_model, vocab), jnp.float32, -bound, bound)
    b = jax.random.uniform(kb, (vocab,), jnp.float32, -bound, bound)
    x = jax.random.normal(kx, (B, S, d_model), jnp.float32)

    out = generator_forward(x, w, b)
    jax.block_until_ready(out)
    assert out.shape == (B, S, vocab)

    # Reference mirroring the kernel's bf16-in / f32-accumulate matmul.
    xb = x.astype(jnp.bfloat16).astype(jnp.float32)
    wb = w.astype(jnp.bfloat16).astype(jnp.float32)
    ref_bf16 = jax.nn.log_softmax(jnp.einsum("bsd,dv->bsv", xb, wb) + b, axis=-1)
    assert jnp.allclose(out, ref_bf16, atol=2e-3), "mismatch vs bf16-matched reference"

    # Loose sanity check against the full-f32 reference.
    ref_f32 = jax.nn.log_softmax(jnp.einsum("bsd,dv->bsv", x, w) + b, axis=-1)
    assert jnp.allclose(out, ref_f32, atol=5e-2), "mismatch vs f32 reference"

    print("KERNEL_OK")
</pallas_src>

<mosaic_0001>
module attributes {stable_mosaic.version = 11 : i64} {
  func.func @_generator_kernel(%arg0: i32, %arg1: i32, %arg2: memref<16x32xbf16, #tpu.memory_space<vmem>>, %arg3: memref<32x128xbf16, #tpu.memory_space<vmem>>, %arg4: memref<1x128xf32, #tpu.memory_space<vmem>>, %arg5: memref<16x128xf32, #tpu.memory_space<vmem>>, %arg6: memref<16x128xf32, #tpu.memory_space<vmem>>, %arg7: memref<16x1xf32, #tpu.memory_space<vmem>>, %arg8: memref<16x1xf32, #tpu.memory_space<vmem>>) attributes {dimension_semantics = [#tpu.dimension_semantics<parallel>, #tpu.dimension_semantics<arbitrary>], iteration_bounds = array<i64: 1, 1>, scalar_prefetch = 0 : i64, scratch_operands = 3 : i64, tpu.core_type = #tpu.core_type<tc>, window_params = [{transform_indices = @transform_0, window_bounds = array<i64: 16, 32>}, {transform_indices = @transform_1, window_bounds = array<i64: 32, 128>}, {transform_indices = @transform_2, window_bounds = array<i64: 1, 128>}, {transform_indices = @transform_3, window_bounds = array<i64: 16, 128>}]} {
    %c0_i32 = arith.constant 0 : i32
    %0 = arith.cmpi eq, %arg1, %c0_i32 : i32
    %1 = arith.extui %0 : i1 to i32
    %c0_i32_0 = arith.constant 0 : i32
    %2 = arith.cmpi ne, %1, %c0_i32_0 : i32
    scf.if %2 {
      %cst_19 = arith.constant -1.000000e+30 : f32
      %32 = vector.broadcast %cst_19 : f32 to vector<16x1xf32>
      %c0_20 = arith.constant 0 : index
      %c0_21 = arith.constant 0 : index
      %33 = vector.load %arg7[%c0_20, %c0_21] : memref<16x1xf32, #tpu.memory_space<vmem>>, vector<16x1xf32>
      tpu.vector_store %arg7[%c0_20, %c0_21], %32 {strides = array<i32>} : memref<16x1xf32, #tpu.memory_space<vmem>>, vector<16x1xf32>,
      %cst_22 = arith.constant 0.000000e+00 : f32
      %34 = vector.broadcast %cst_22 : f32 to vector<16x1xf32>
      %c0_23 = arith.constant 0 : index
      %c0_24 = arith.constant 0 : index
      %35 = vector.load %arg8[%c0_23, %c0_24] : memref<16x1xf32, #tpu.memory_space<vmem>>, vector<16x1xf32>
      tpu.vector_store %arg8[%c0_23, %c0_24], %34 {strides = array<i32>} : memref<16x1xf32, #tpu.memory_space<vmem>>, vector<16x1xf32>,
    } else {
    }
    %c0 = arith.constant 0 : index
    %c0_1 = arith.constant 0 : index
    %3 = vector.load %arg2[%c0, %c0_1] : memref<16x32xbf16, #tpu.memory_space<vmem>>, vector<16x32xbf16>
    %c0_2 = arith.constant 0 : index
    %c0_3 = arith.constant 0 : index
    %4 = vector.load %arg3[%c0_2, %c0_3] : memref<32x128xbf16, #tpu.memory_space<vmem>>, vector<32x128xbf16>
    %cst = arith.constant dense<0.000000e+00> : vector<16x128xf32>
    %5 = tpu.matmul %3, %4, %cst {dimension_numbers = #tpu.dot_dimension_numbers<[1], [0], [0], [1], [0, 0, 1, 1], [], []>} : vector<16x32xbf16>, vector<32x128xbf16>, vector<16x128xf32> -> vector<16x128xf32>
    %c0_4 = arith.constant 0 : index
    %c0_5 = arith.constant 0 : index
    %6 = vector.load %arg4[%c0_4, %c0_5] : memref<1x128xf32, #tpu.memory_space<vmem>>, vector<1x128xf32>
    %7 = vector.broadcast %6 : vector<1x128xf32> to vector<16x128xf32>
    %8 = arith.addf %5, %7 : vector<16x128xf32>
    %c0_6 = arith.constant 0 : index
    %c0_7 = arith.constant 0 : index
    %9 = vector.load %arg7[%c0_6, %c0_7] : memref<16x1xf32, #tpu.memory_space<vmem>>, vector<16x1xf32>
    %cst_8 = arith.constant dense<0xFF800000> : vector<16xf32>
    %10 = vector.multi_reduction <maximumf>, %8, %cst_8 [1] : vector<16x128xf32> to vector<16xf32>
    %11 = vector.shape_cast %10 : vector<16xf32> to vector<16x1xf32>
    %12 = arith.maximumf %9, %11 : vector<16x1xf32>
    %13 = arith.subf %9, %12 : vector<16x1xf32>
    %14 = math.exp %13 : vector<16x1xf32>
    %c0_9 = arith.constant 0 : index
    %c0_10 = arith.constant 0 : index
    %15 = vector.load %arg8[%c0_9, %c0_10] : memref<16x1xf32, #tpu.memory_space<vmem>>, vector<16x1xf32>
    %16 = arith.mulf %14, %15 : vector<16x1xf32>
    %17 = vector.broadcast %12 : vector<16x1xf32> to vector<16x128xf32>
    %18 = arith.subf %8, %17 : vector<16x128xf32>
    %19 = math.exp %18 : vector<16x128xf32>
    %cst_11 = arith.constant dense<0.000000e+00> : vector<16xf32>
    %20 = vector.multi_reduction <add>, %19, %cst_11 [1] : vector<16x128xf32> to vector<16xf32>
    %21 = vector.shape_cast %20 : vector<16xf32> to vector<16x1xf32>
    %22 = arith.addf %16, %21 : vector<16x1xf32>
    %c0_12 = arith.constant 0 : index
    %c0_13 = arith.constant 0 : index
    %23 = vector.load %arg8[%c0_12, %c0_13] : memref<16x1xf32, #tpu.memory_space<vmem>>, vector<16x1xf32>
    tpu.vector_store %arg8[%c0_12, %c0_13], %22 {strides = array<i32>} : memref<16x1xf32, #tpu.memory_space<vmem>>, vector<16x1xf32>,
    %c0_14 = arith.constant 0 : index
    %c0_15 = arith.constant 0 : index
    %24 = vector.load %arg7[%c0_14, %c0_15] : memref<16x1xf32, #tpu.memory_space<vmem>>, vector<16x1xf32>
    tpu.vector_store %arg7[%c0_14, %c0_15], %12 {strides = array<i32>} : memref<16x1xf32, #tpu.memory_space<vmem>>, vector<16x1xf32>,
    %c128_i32 = arith.constant 128 : i32
    %25 = arith.muli %arg1, %c128_i32 : i32
    %26 = tpu.assume_multiple %25, 128 : i32
    %c0_16 = arith.constant 0 : index
    %27 = arith.index_cast %26 : i32 to index
    %28 = vector.load %arg6[%c0_16, %27] : memref<16x128xf32, #tpu.memory_space<vmem>>, vector<16x128xf32>
    tpu.vector_store %arg6[%c0_16, %27], %8 {strides = array<i32>} : memref<16x128xf32, #tpu.memory_space<vmem>>, vector<16x128xf32>,
    %c0_i32_17 = arith.constant 0 : i32
    %29 = arith.cmpi eq, %arg1, %c0_i32_17 : i32
    %30 = arith.extui %29 : i1 to i32
    %c0_i32_18 = arith.constant 0 : i32
    %31 = arith.cmpi ne, %30, %c0_i32_18 : i32
    scf.if %31 {
      %c0_19 = arith.constant 0 : index
      %c0_20 = arith.constant 0 : index
      %32 = vector.load %arg7[%c0_19, %c0_20] : memref<16x1xf32, #tpu.memory_space<vmem>>, vector<16x1xf32>
      %c0_21 = arith.constant 0 : index
      %c0_22 = arith.constant 0 : index
      %33 = vector.load %arg8[%c0_21, %c0_22] : memref<16x1xf32, #tpu.memory_space<vmem>>, vector<16x1xf32>
      %34 = math.log %33 : vector<16x1xf32>
      %35 = arith.addf %32, %34 : vector<16x1xf32>
      %c0_23 = arith.constant 0 : index
      %c0_24 = arith.constant 0 : index
      %36 = vector.load %arg6[%c0_23, %c0_24] : memref<16x128xf32, #tpu.memory_space<vmem>>, vector<16x128xf32>
      %37 = vector.broadcast %35 : vector<16x1xf32> to vector<16x128xf32>
      %38 = arith.subf %36, %37 : vector<16x128xf32>
      %c0_25 = arith.constant 0 : index
      %c0_26 = arith.constant 0 : index
      %39 = vector.load %arg5[%c0_25, %c0_26] : memref<16x128xf32, #tpu.memory_space<vmem>>, vector<16x128xf32>
      tpu.vector_store %arg5[%c0_25, %c0_26], %38 {strides = array<i32>} : memref<16x128xf32, #tpu.memory_space<vmem>>, vector<16x128xf32>,
    } else {
    }
    return
  }
  func.func @transform_0(%arg0: i32, %arg1: i32) -> (i32, i32) {
    %c0_i32 = arith.constant 0 : i32
    %c0_i32_0 = arith.constant 0 : i32
    return %arg0, %c0_i32 : i32, i32
  }
  func.func @transform_1(%arg0: i32, %arg1: i32) -> (i32, i32) {
    %c0_i32 = arith.constant 0 : i32
    %c0_i32_0 = arith.constant 0 : i32
    return %c0_i32, %arg1 : i32, i32
  }
  func.func @transform_2(%arg0: i32, %arg1: i32) -> (i32, i32) {
    %c0_i32 = arith.constant 0 : i32
    %c0_i32_0 = arith.constant 0 : i32
    return %c0_i32, %arg1 : i32, i32
  }
  func.func @transform_3(%arg0: i32, %arg1: i32) -> (i32, i32) {
    %c0_i32 = arith.constant 0 : i32
    %c0_i32_0 = arith.constant 0 : i32
    return %arg0, %c0_i32 : i32, i32
  }
}

</mosaic_0001>

<bundles_post_ra>
// kernel: generator_forward.1
= control target key start
LH: loop header
LB: loop body
LE: loop exit
PB: predicated region body
PF: predicated region fallthrough
CT: control target
= control target key end

     0   :  { %s291_s0 = inlined_call_operand.vmem [shape: bf16[16,32], index: 0, kind: input, shape index: {}]   ;;  %s292_s1 = inlined_call_operand.vmem [shape: bf16[32,128], index: 1, kind: input, shape index: {}]   ;;  %s293_s2 = inlined_call_operand.vmem [shape: f32[1,128], index: 2, kind: input, shape index: {}]   ;;  %s294_s3 = inlined_call_operand.hbm [shape: f32[16,128], index: 3, kind: output, shape index: {}]  }
   0x1   :  { %v184_v0 = vld [vmem:[%s292_s1 + $0x8] sm:$0xff] }
   0x2   :  { %8 = vsyncpa [#allocation6], 0  ;;  %62 = vmatpush.bf16.msra.mxu0 %v184_v0  ;;  %v183_v1 = vld [vmem:[%s292_s1] sm:$0xff]  ;;  %vm52_vm0 = vcmask 261120   ;;  %vm20_vm1 = vcmask 7168   ;;  %v233_v9 = vmov 0  }
   0x3   :  { %v182_v2 = vld [vmem:[%s291_s0] sm:$0xff]  ;;  %v232_v8 = vmov -1e+30   ;;  %191 = vset.pattern.permute.xlu1 %v233_v9  ;;  %192 = vset.pattern.permute.xlu0 %v233_v9  ;;  %v234_v10 = vmov 0.0   ;;  %s235_s0 = smov [#allocation5]   ;;  %s156_s21 = sshll.u32 %s294_s3, 4  ;;  %s157_s21 = int_to_ptr.hbm [resolvable:$true] %s156_s21 }
   0x4   :  { %v193_v3 = vld [vmem:[%s293_s2] ss:$0 sm:$0xff]  ;;  %21 = vst.msk [vmem:[#allocation3] sm:$0xff] %vm20_vm1, %v232_v8  ;;  %s154_s1 = sshll.u32 %s235_s0, 4  ;;  %s236_s22 = smov 128   ;;  %s155_s1 = int_to_ptr.vmem [resolvable:$true] %s154_s1 }
   0x5   :  { %22 = vst.msk [vmem:[#allocation3 + $0x8] sm:$0xff] %vm20_vm1, %v232_v8  ;;  %s237_s23 = smov 8  }
   0x6   :  { %63 = vmatpush.bf16.msra.mxu0 %v183_v1  ;;  %23 = vst.msk [vmem:[#allocation4] sm:$0xff] %vm20_vm1, %v234_v10 }
   0x7   :  { %24 = vst.msk [vmem:[#allocation4 + $0x8] sm:$0xff] %vm20_vm1, %v234_v10 }
   0x9   :  { %181 = vmatmul.msk.bf16.vlgmr.msra.gmra.mxu0 %vm52_vm0, %v182_v2 }
   0xb   :  { %v70_v11 = vld [vmem:[#allocation3] sm:$0xff] }
   0xc   :  { %v71_v15 = vld [vmem:[#allocation3 + $0x8] sm:$0xff] }
   0xd   :  { %v84_v30 = vld [vmem:[#allocation4] sm:$0xff] }
   0xe   :  { %v85_v35 = vld [vmem:[#allocation4 + $0x8] sm:$0xff] }
  0x86   :  { %v65_v4 = vpop.f32.mrf.mxu0 }
  0x87   :  { %v270_v5 = vadd.f32 %v193_v3, %v65_v4 }
  0x89   :  { %72 = vmax.xlane.f32.xlu0 %v270_v5 }
  0x8e   :  { %v67_v6 = vpop.f32.mrf.mxu0 }
  0x8f   :  { %v273_v7 = vadd.f32 %v193_v3, %v67_v6 }
  0x91   :  { %74 = vmax.xlane.f32.xlu0 %v273_v7 }
  0xfc   :  { %v73_v12 = vpop.xlane.xlu0 %72 }
  0xfd   :  { %v76_v13 = vmax.f32 %v70_v11, %v73_v12 }
  0xff   :  { %v78_v14 = vsub.f32 %v70_v11, %v76_v13  ;;  %113 = vst.msk [vmem:[#allocation3] sm:$0xff] %vm20_vm1, %v76_v13  ;;  %90 = vperm.xlu1 %191, %v76_v13  }
 0x101   :  { %v80_v27 = vmul.f32 1.442695, %v78_v14 }
 0x104   :  { %v75_v16 = vpop.xlane.xlu0 %74 }
 0x105   :  { %v77_v17 = vmax.f32 %v71_v15, %v75_v16 }
 0x106   :  { %v124_v43 = vld [vmem:[#allocation3] sm:$0xff] }
 0x107   :  { %v79_v18 = vsub.f32 %v71_v15, %v77_v17  ;;  %114 = vst.msk [vmem:[#allocation3 + $0x8] sm:$0xff] %vm20_vm1, %v77_v17  ;;  %95 = vperm.xlu1 %191, %v77_v17  }
 0x109   :  { %v82_v28 = vmul.f32 1.442695, %v79_v18 }
 0x10e   :  { %v125_v47 = vld [vmem:[#allocation3 + $0x8] sm:$0xff] }
 0x171   :  { %v91_v19 = vpop.permute.xlu1 %90 }
 0x172   :  { %v98_v20 = vsub.f32 %v270_v5, %v91_v19 }
 0x174   :  { %v100_v21 = vmul.f32 1.442695, %v98_v20 }
 0x176   :  { %194 = vpow2.f32 %v100_v21 }
 0x179   :  { %v96_v22 = vpop.permute.xlu1 %95 }
 0x17a   :  { %v99_v23 = vsub.f32 %v273_v7, %v96_v22 }
 0x17c   :  { %v195_v24 = vpop.eup %194  ;;  %v102_v25 = vmul.f32 1.442695, %v99_v23 }
 0x17d   :  { %104 = vadd.xlane.f32.xlu2 %v195_v24 }
 0x17e   :  { %196 = vpow2.f32 %v102_v25 }
 0x17f   :  { %198 = vpow2.f32 %v80_v27 }
 0x180   :  { %200 = vpow2.f32 %v82_v28 }
 0x184   :  { %v197_v26 = vpop.eup %196 }
 0x185   :  { %106 = vadd.xlane.f32.xlu2 %v197_v26  ;;  %v199_v29 = vpop.eup %198 }
 0x186   :  { %v86_v31 = vmul.f32 %v199_v29, %v84_v30  ;;  %v201_v34 = vpop.eup %200 }
 0x187   :  { %v87_v36 = vmul.f32 %v201_v34, %v85_v35 }
 0x1f0   :  { %v105_v32 = vpop.xlane.xlu2 %104 }
 0x1f1   :  { %v108_v33 = vadd.f32 %v105_v32, %v86_v31 }
 0x1f3   :  { %111 = vst.msk [vmem:[#allocation4] sm:$0xff] %vm20_vm1, %v108_v33 }
 0x1f8   :  { %v107_v37 = vpop.xlane.xlu2 %106 }
 0x1f9   :  { %v109_v38 = vadd.f32 %v107_v37, %v87_v36 }
 0x1fa   :  { %v126_v39 = vld [vmem:[#allocation4] sm:$0xff] }
 0x1fb   :  { %112 = vst.msk [vmem:[#allocation4 + $0x8] sm:$0xff] %vm20_vm1, %v109_v38  ;;  %202 = vlog2.f32 %v126_v39 }
 0x201   :  { %v203_v40 = vpop.eup %202 }
 0x202   :  { %v129_v41 = vmul.f32 0.6931472, %v203_v40  ;;  %v127_v42 = vld [vmem:[#allocation4 + $0x8] sm:$0xff] }
 0x203   :  { %204 = vlog2.f32 %v127_v42 }
 0x204   :  { %v132_v44 = vadd.f32 %v129_v41, %v124_v43 }
 0x206   :  { %138 = vperm.xlu0 %192, %v132_v44  }
 0x209   :  { %v205_v45 = vpop.eup %204 }
 0x20a   :  { %v131_v46 = vmul.f32 0.6931472, %v205_v45 }
 0x20c   :  { %v133_v48 = vadd.f32 %v131_v46, %v125_v47 }
 0x20e   :  { %143 = vperm.xlu1 %191, %v133_v48  }
 0x278   :  { %v139_v49 = vpop.permute.xlu0 %138 }
 0x279   :  { %v146_v50 = vsub.f32 %v270_v5, %v139_v49 }
 0x27b   :  { %148 = vst [vmem:[#allocation5] sm:$0xff] %v146_v50 }
 0x280   :  { %v144_v51 = vpop.permute.xlu1 %143 }
 0x281   :  { %v147_v52 = vsub.f32 %v273_v7, %v144_v51 }
 0x283   :  { %149 = vst [vmem:[#allocation5 + $0x8] sm:$0xff] %v147_v52 }
 0x284   :  { %162 = dma.vmem_to_hbm [thread:$0]  %s155_s1, 256, %s157_s21, [#allocation6], %s236_s22, %s236_s22, %s237_s23  }
 0x285   :  { %230 = dma.done.wait [#allocation6], 256  }
 0x286   :  { %231 = vsyncadd [#allocation6], 4294967040 }
 0x287   :  { %167 = vsyncpa [#allocation6], 1 }

</bundles_post_ra>
